<compile_context>
chip_gen: v5e
topology: v5e:2x2
jax: 0.10.0
libtpu: 0.0.40
codegen_flags: <defaults>
</compile_context>

<pallas_src>
import jax
import jax.numpy as jnp
from jax import lax
from jax.experimental import pallas as pl
from jax.experimental.pallas import tpu as pltpu

LANE = 128  # parameter-slab / output lane width


def _r8(n):
    return -(-n // 8) * 8


def _elu(v):
    # PyTorch ELU (alpha=1); exp(min(v,0))-1 keeps the untaken branch finite.
    return jnp.where(v > 0, v, jnp.exp(jnp.minimum(v, 0.0)) - 1.0)


def _sigmoid(v):
    return 1.0 / (1.0 + jnp.exp(-v))


# ----------------------------------------------------------------------------
# parameters (PyTorch-faithful layout), mask
# ----------------------------------------------------------------------------
def build_w_mask(N):
    idx = jnp.arange(N)
    a = idx[:, None, None]
    b = idx[None, :, None]
    c = idx[None, None, :]
    return ((a != b) & (b != c) & (a != c)).astype(jnp.float32)  # (N, N, N)


def init_params(key, N, C, G, G2, H):
    keys = iter(jax.random.split(key, 64))

    def u(shape, fan_in):
        bound = 1.0 / (float(fan_in) ** 0.5)
        return jax.random.uniform(next(keys), shape, jnp.float32, -bound, bound)

    p = {}
    # hazard1: GRU(N+1 -> G), per-gate, stored (in_features, out_features)
    for g in ("r", "z", "n"):
        p[f"w1_i{g}"] = u((N + 1, G), G)
        p[f"w1_h{g}"] = u((G, G), G)
        p[f"b1_i{g}"] = u((1, G), G)
        p[f"b1_h{g}"] = u((1, G), G)
    # hazard2: GRU(G -> G2)
    for g in ("r", "z", "n"):
        p[f"w2_i{g}"] = u((G, G2), G2)
        p[f"w2_h{g}"] = u((G2, G2), G2)
        p[f"b2_i{g}"] = u((1, G2), G2)
        p[f"b2_h{g}"] = u((1, G2), G2)
    # hazard_out: ELU -> Linear(G2 -> 1)
    p["haz_w"] = u((G2, 1), G2)
    p["haz_b"] = u((1, 1), G2)
    # g: Linear(N+1+C -> 8) -> ELU -> Linear(8 -> N, no bias)
    p["g_w1"] = u((N + 1 + C, 8), N + 1 + C)
    p["g_b1"] = u((1, 8), N + 1 + C)
    p["g_w2"] = u((8, N), 8)
    # sigma_nn: Linear(N->N) -> ELU -> Linear(N->N) -> Sigmoid
    p["s_w1"] = u((N, N), N)
    p["s_b1"] = u((1, N), N)
    p["s_w2"] = u((N, N), N)
    p["s_b2"] = u((1, N), N)
    # DiagonalFunc: per-node MLP (2+C) -> H -> H -> 1
    p["f_w1"] = u((N, 2 + C, H), 2 + C)
    p["f_b1"] = u((N, H), 2 + C)
    p["f_w2"] = u((N, H, H), H)
    p["f_b2"] = u((N, H), H)
    p["f_w3"] = u((N, H, 1), H)
    p["f_b3"] = u((N, 1), H)
    return p


# ----------------------------------------------------------------------------
# parameter packing: one lane-padded (rows, 128) f32 slab, static row offsets
# ----------------------------------------------------------------------------
def _pack_slab(entries):
    offsets = {}
    row = 0
    for name, a in entries.items():
        r, c = a.shape
        assert c <= LANE, (name, a.shape)
        offsets[name] = (row, r, c)
        row += _r8(r)
    slab = jnp.zeros((row, LANE), jnp.float32)
    for name, a in entries.items():
        off, r, c = offsets[name]
        slab = slab.at[off:off + r, 0:c].set(jnp.asarray(a, jnp.float32))
    return slab, offsets


def pack_all(params, N, C, G, G2, H):
    p = params
    D = N + 1 + C + G + G2          # data-slab width: [x, t, ctx, h1, h2]
    NH = N * H
    Gp, G2p = _r8(G), _r8(G2)       # per-gate lane pitch
    assert 4 * Gp <= LANE and 4 * G2p <= LANE and NH <= LANE
    o_h1 = N + 1 + C
    f32 = jnp.float32
    e = {}

    # ---- hazard1 GRU fused: one (D, 4*Gp) matrix over the whole data row.
    #      lane blocks: [ r | z | n_input | n_hidden ]; ctx / h2 rows are 0.
    w1 = jnp.zeros((D, 4 * Gp), f32)
    w1 = w1.at[0:N + 1, 0:G].set(p["w1_ir"])
    w1 = w1.at[0:N + 1, Gp:Gp + G].set(p["w1_iz"])
    w1 = w1.at[0:N + 1, 2 * Gp:2 * Gp + G].set(p["w1_in"])
    w1 = w1.at[o_h1:o_h1 + G, 0:G].set(p["w1_hr"])
    w1 = w1.at[o_h1:o_h1 + G, Gp:Gp + G].set(p["w1_hz"])
    w1 = w1.at[o_h1:o_h1 + G, 3 * Gp:3 * Gp + G].set(p["w1_hn"])
    b1 = jnp.zeros((1, 4 * Gp), f32)
    b1 = b1.at[:, 0:G].set(p["b1_ir"] + p["b1_hr"])
    b1 = b1.at[:, Gp:Gp + G].set(p["b1_iz"] + p["b1_hz"])
    b1 = b1.at[:, 2 * Gp:2 * Gp + G].set(p["b1_in"])
    b1 = b1.at[:, 3 * Gp:3 * Gp + G].set(p["b1_hn"])
    e["w1_all"], e["b1_all"] = w1, b1

    # ---- hazard2 GRU: per-gate lane blocks; input and hidden sides separate.
    w2i = jnp.zeros((G, 4 * G2p), f32)
    w2i = w2i.at[:, 0:G2].set(p["w2_ir"])
    w2i = w2i.at[:, G2p:G2p + G2].set(p["w2_iz"])
    w2i = w2i.at[:, 2 * G2p:2 * G2p + G2].set(p["w2_in"])
    w2h = jnp.zeros((G2, 4 * G2p), f32)
    w2h = w2h.at[:, 0:G2].set(p["w2_hr"])
    w2h = w2h.at[:, G2p:G2p + G2].set(p["w2_hz"])
    w2h = w2h.at[:, 3 * G2p:3 * G2p + G2].set(p["w2_hn"])
    b2 = jnp.zeros((1, 4 * G2p), f32)
    b2 = b2.at[:, 0:G2].set(p["b2_ir"] + p["b2_hr"])
    b2 = b2.at[:, G2p:G2p + G2].set(p["b2_iz"] + p["b2_hz"])
    b2 = b2.at[:, 2 * G2p:2 * G2p + G2].set(p["b2_in"])
    b2 = b2.at[:, 3 * G2p:3 * G2p + G2].set(p["b2_hn"])
    e["w2_ih"], e["w2_hh"], e["b2_all"] = w2i, w2h, b2

    e["haz_w"], e["haz_b"] = p["haz_w"], p["haz_b"]
    e["g_w1"], e["g_b1"], e["g_w2"] = p["g_w1"], p["g_b1"], p["g_w2"]
    e["s_w1"], e["s_b1"] = p["s_w1"], p["s_b1"]
    e["s_w2"], e["s_b2"] = p["s_w2"], p["s_b2"]

    # ---- DiagonalFunc collapsed to dense / block-diagonal matmuls; the last
    #      projection is stored transposed (N, NH) and used via dot_general.
    fw1, fb1 = p["f_w1"], p["f_b1"]
    fw2, fb2 = p["f_w2"], p["f_b2"]
    fw3, fb3 = p["f_w3"], p["f_b3"]
    W1f = jnp.zeros((N + 1 + C, NH), f32)       # acts on [x, t_norm, ctx]
    W2bd = jnp.zeros((NH, NH), f32)
    W3t = jnp.zeros((N, NH), f32)
    for j in range(N):
        sl = slice(j * H, (j + 1) * H)
        W1f = W1f.at[j, sl].set(fw1[j, 0, :])        # x_j part
        W1f = W1f.at[N:, sl].set(fw1[j, 1:, :])      # z = (t_norm, ctx) part
        W2bd = W2bd.at[sl, sl].set(fw2[j])
        W3t = W3t.at[j, sl].set(fw3[j, :, 0])
    e["fd_w1"], e["fd_b1"] = W1f, fb1.reshape(1, NH)
    e["fd_w2"], e["fd_b2"] = W2bd, fb2.reshape(1, NH)
    e["fd_w3t"], e["fd_b3"] = W3t, fb3.reshape(1, N)

    return _pack_slab(e)


# ----------------------------------------------------------------------------
# Pallas kernel + wrapper
# ----------------------------------------------------------------------------
def make_sde_forward(params, w_mask, mean_T, std_T, N, C, G, G2, H):
    slab, offs = pack_all(params, N, C, G, G2, H)

    D = N + 1 + C + G + G2
    NH = N * H
    Gp, G2p = _r8(G), _r8(G2)
    o_h1 = N + 1 + C
    o_h2 = o_h1 + G

    # lane layout of the single (Mp, 128) output slab
    c_dx, c_sig, c_h2, c_h1 = 0, N, 2 * N, 2 * N + G2
    c_lg = c_h1 + G
    c_lds = c_lg + 1
    used = c_lds + 1
    assert used <= LANE

    # rough per-row MXU work (for the CostEstimate)
    kn_sum = (D * 4 * Gp + G * 4 * G2p + G2 * 4 * G2p + G2
              + N * N
              + (N + 1 + C) * NH + NH * NH + NH * N
              + (N + 1 + C) * 8 + 8 * N
              + N * N + N * N)

    def kernel(d_ref, b_ref, p_ref, out_ref):
        def P(name):                        # static slab view, zero runtime cost
            off, r, c = offs[name]
            return p_ref[off:off + r, 0:c]

        def mm(a, b):
            return jnp.dot(a, b, preferred_element_type=jnp.float32)

        def mm_rt(a, b):                    # a @ b.T without materializing b.T
            return lax.dot_general(a, b, (((1,), (1,)), ((), ())),
                                   preferred_element_type=jnp.float32)

        data = d_ref[...]                   # (Mp, D) = [x | t_norm | ctx | h1 | h2]
        x = data[:, 0:N]
        inp_g = data[:, 0:N + 1 + C]
        h1 = data[:, o_h1:o_h1 + G]
        h2 = data[:, o_h2:o_h2 + G2]

        # ---- hazard1 GRU: ONE fused MXU push over the full data row ----------
        pre1 = mm(data, P("w1_all")) + P("b1_all")              # (Mp, 4*Gp)
        r1 = _sigmoid(pre1[:, 0:G])
        z1 = _sigmoid(pre1[:, Gp:Gp + G])
        n1 = jnp.tanh(pre1[:, 2 * Gp:2 * Gp + G]
                      + r1 * pre1[:, 3 * Gp:3 * Gp + G])
        h1n = (1.0 - z1) * n1 + z1 * h1

        # ---- hazard2 GRU: hidden-side dot is off the serial chain -------------
        pre2h = mm(h2, P("w2_hh")) + P("b2_all")
        pre2 = mm(h1n, P("w2_ih")) + pre2h                       # (Mp, 4*G2p)
        r2 = _sigmoid(pre2[:, 0:G2])
        z2 = _sigmoid(pre2[:, G2p:G2p + G2])
        n2 = jnp.tanh(pre2[:, 2 * G2p:2 * G2p + G2]
                      + r2 * pre2[:, 3 * G2p:3 * G2p + G2])
        h2n = (1.0 - z2) * n2 + z2 * h2

        log_gamma = mm(_elu(h2n), P("haz_w")) + P("haz_b")       # (Mp, 1)
        log_dS = -jnp.exp(log_gamma)                             # (Mp, 1)

        # ---- pairwise interaction drift: Wx = x @ B.T / N ---------------------
        Wx = mm_rt(x, b_ref[...]) * (1.0 / N)

        # ---- f (DiagonalFunc) as dense / block-diagonal matmuls ---------------
        a1 = _elu(mm(inp_g, P("fd_w1")) + P("fd_b1"))            # (Mp, N*H)
        a2 = _elu(mm(a1, P("fd_w2")) + P("fd_b2"))               # (Mp, N*H)
        f_out = mm_rt(a2, P("fd_w3t")) + P("fd_b3")              # (Mp, N)

        # ---- g(cat(x, z)) ------------------------------------------------------
        g_out = mm(_elu(mm(inp_g, P("g_w1")) + P("g_b1")), P("g_w2"))

        # ---- sigma_x(x) --------------------------------------------------------
        sigma = _sigmoid(mm(_elu(mm(x, P("s_w1")) + P("s_b1")), P("s_w2"))
                         + P("s_b2")) + 1e-05

        # ---- single lane-dense output slab (one full-width store) -------------
        dx = Wx + f_out + g_out
        pad = jnp.zeros((dx.shape[0], LANE - used), jnp.float32)
        out_ref[...] = jnp.concatenate(
            [dx, sigma, h2n, h1n, log_gamma, log_dS, pad], axis=-1)

    @jax.jit
    def forward(x, h, t, context, W):
        M = x.shape[0]
        Mp = max(8, _r8(M))                  # full (8,128) vreg occupancy
        t_norm = (t.reshape(-1, 1) - mean_T) / std_T
        data = jnp.concatenate(
            [x, t_norm, context, h[0][0], h[1][0]], axis=-1).astype(jnp.float32)
        if Mp != M:
            data = jnp.pad(data, ((0, Mp - M), (0, 0)))
        # W changes per call -> reduce it to B in the wrapper (fuses with concat)
        A = w_mask * W
        Bmat = (jnp.sum(A, axis=1) + jnp.sum(A, axis=2)).astype(jnp.float32)

        cost = pl.CostEstimate(
            flops=int(2 * Mp * kn_sum),
            transcendentals=int(Mp * 360),
            bytes_accessed=int(4 * (Mp * D + N * N
                                    + slab.shape[0] * LANE + Mp * LANE)))

        out = pl.pallas_call(
            kernel,
            out_shape=jax.ShapeDtypeStruct((Mp, LANE), jnp.float32),
            in_specs=[pl.BlockSpec(memory_space=pltpu.MemorySpace.VMEM)] * 3,
            out_specs=pl.BlockSpec(memory_space=pltpu.MemorySpace.VMEM),
            cost_estimate=cost,
        )(data, Bmat, slab)

        out = out[:M]
        dx = out[:, c_dx:c_dx + N]
        sigma = out[:, c_sig:c_sig + N]
        h2o = out[:, c_h2:c_h2 + G2]
        h1o = out[:, c_h1:c_h1 + G]
        log_gamma = out[:, c_lg:c_lg + 1]
        log_dS = out[:, c_lds]
        return dx, log_dS, log_gamma, (h1o[None], h2o[None]), sigma

    return forward


# ----------------------------------------------------------------------------
# pure-JAX reference (mirrors the PyTorch module structure) for validation
# ----------------------------------------------------------------------------
def reference_forward(p, w_mask, mean_T, std_T, N, x, h, t, context, W):
    t_norm = (t[:, None] - mean_T) / std_T
    z = jnp.concatenate([t_norm, context], axis=-1)
    inp1 = jnp.concatenate([x, t_norm], axis=-1)
    h1, h2 = h[0][0], h[1][0]

    r1 = _sigmoid(inp1 @ p["w1_ir"] + p["b1_ir"] + h1 @ p["w1_hr"] + p["b1_hr"])
    u1 = _sigmoid(inp1 @ p["w1_iz"] + p["b1_iz"] + h1 @ p["w1_hz"] + p["b1_hz"])
    n1 = jnp.tanh(inp1 @ p["w1_in"] + p["b1_in"] + r1 * (h1 @ p["w1_hn"] + p["b1_hn"]))
    h1n = (1.0 - u1) * n1 + u1 * h1

    r2 = _sigmoid(h1n @ p["w2_ir"] + p["b2_ir"] + h2 @ p["w2_hr"] + p["b2_hr"])
    u2 = _sigmoid(h1n @ p["w2_iz"] + p["b2_iz"] + h2 @ p["w2_hz"] + p["b2_hz"])
    n2 = jnp.tanh(h1n @ p["w2_in"] + p["b2_in"] + r2 * (h2 @ p["w2_hn"] + p["b2_hn"]))
    h2n = (1.0 - u2) * n2 + u2 * h2

    log_gamma = _elu(h2n) @ p["haz_w"] + p["haz_b"]

    A = w_mask * W
    B = A.sum(axis=1) + A.sum(axis=2)
    Wx = x @ B.T / N

    f_cols = []
    for i in range(N):
        inp_i = jnp.concatenate([x[:, i:i + 1], z], axis=-1)
        a1 = _elu(inp_i @ p["f_w1"][i] + p["f_b1"][i][None])
        a2 = _elu(a1 @ p["f_w2"][i] + p["f_b2"][i][None])
        f_cols.append(a2 @ p["f_w3"][i] + p["f_b3"][i][None])
    f_out = jnp.concatenate(f_cols, axis=-1)

    inp_g = jnp.concatenate([x, z], axis=-1)
    g_out = _elu(inp_g @ p["g_w1"] + p["g_b1"]) @ p["g_w2"]

    sigma = _sigmoid(_elu(x @ p["s_w1"] + p["s_b1"]) @ p["s_w2"] + p["s_b2"]) + 1e-05
    dx = Wx + f_out + g_out
    log_dS = -jnp.exp(log_gamma).reshape(-1)
    return dx, log_dS, log_gamma, (h1n[None], h2n[None]), sigma


# ----------------------------------------------------------------------------
if __name__ == "__main__":
    # Small, module-consistent shapes.
    N, C, G, H, M = 8, 4, 23, 12, 4           # N vars, context, gamma_size, f_nn_size, batch
    G2 = G - 15
    mean_T, std_T = 40.0, 10.0

    key = jax.random.PRNGKey(0)
    kp, kx, kt, kc, kW, kh1, kh2 = jax.random.split(key, 7)

    params = init_params(kp, N, C, G, G2, H)
    w_mask = build_w_mask(N)

    x = jax.random.normal(kx, (M, N), jnp.float32)
    t = jax.random.uniform(kt, (M,), jnp.float32, 30.0, 80.0)
    context = jax.random.normal(kc, (M, C), jnp.float32)
    W = 0.1 * jax.random.normal(kW, (N, N, N), jnp.float32)
    h = (0.01 * jax.random.normal(kh1, (1, M, G), jnp.float32),
         0.01 * jax.random.normal(kh2, (1, M, G2), jnp.float32))

    forward = make_sde_forward(params, w_mask, mean_T, std_T, N, C, G, G2, H)
    dx, log_dS, log_Gamma, h_new, sigma = forward(x, h, t, context, W)
    jax.block_until_ready((dx, log_dS, log_Gamma, h_new, sigma))

    # shape / sanity checks
    assert dx.shape == (M, N)
    assert log_dS.shape == (M,)
    assert log_Gamma.shape == (M, 1)
    assert h_new[0].shape == (1, M, G) and h_new[1].shape == (1, M, G2)
    assert sigma.shape == (M, N)
    assert bool(jnp.all(jnp.isfinite(dx))) and bool(jnp.all(sigma > 0))

    # numerical check vs. a high-precision pure-JAX reference (scoped, not global)
    with jax.default_matmul_precision("highest"):
        rdx, rlds, rlg, (rh1, rh2), rsig = reference_forward(
            params, w_mask, mean_T, std_T, N, x, h, t, context, W)
    tol = 4e-2  # covers a worst-case single-pass-bf16 MXU path inside the kernel
    for name, a, b in (("dx", dx, rdx), ("log_dS", log_dS, rlds),
                       ("log_Gamma", log_Gamma, rlg),
                       ("h1", h_new[0], rh1), ("h2", h_new[1], rh2),
                       ("sigma", sigma, rsig)):
        err = float(jnp.max(jnp.abs(a - b)))
        assert bool(jnp.allclose(a, b, rtol=tol, atol=tol)), (name, err)

    print("KERNEL_OK")
</pallas_src>

<mosaic_0001>
module attributes {stable_mosaic.version = 11 : i64} {
  func.func @kernel(%arg0: memref<8x44xf32, #tpu.memory_space<vmem>>, %arg1: memref<8x8xf32, #tpu.memory_space<vmem>>, %arg2: memref<320x128xf32, #tpu.memory_space<vmem>>, %arg3: memref<8x128xf32, #tpu.memory_space<vmem>>) attributes {dimension_semantics = [], scalar_prefetch = 0 : i64, scratch_operands = 0 : i64, tpu.core_type = #tpu.core_type<tc>} {
    %c0 = arith.constant 0 : index
    %c0_0 = arith.constant 0 : index
    %0 = vector.load %arg0[%c0, %c0_0] : memref<8x44xf32, #tpu.memory_space<vmem>>, vector<8x44xf32>
    %1 = vector.extract_strided_slice %0 {offsets = [0, 0], sizes = [8, 8], strides = [1, 1]} : vector<8x44xf32> to vector<8x8xf32>
    %2 = vector.extract_strided_slice %0 {offsets = [0, 0], sizes = [8, 13], strides = [1, 1]} : vector<8x44xf32> to vector<8x13xf32>
    %3 = vector.extract_strided_slice %0 {offsets = [0, 13], sizes = [8, 23], strides = [1, 1]} : vector<8x44xf32> to vector<8x23xf32>
    %4 = vector.extract_strided_slice %0 {offsets = [0, 36], sizes = [8, 8], strides = [1, 1]} : vector<8x44xf32> to vector<8x8xf32>
    %c0_1 = arith.constant 0 : index
    %c0_2 = arith.constant 0 : index
    %5 = vector.load %arg2[%c0_1, %c0_2] : memref<320x128xf32, #tpu.memory_space<vmem>>, vector<44x96xf32>
    %cst = arith.constant dense<0.000000e+00> : vector<8x96xf32>
    %6 = tpu.matmul %0, %5, %cst {dimension_numbers = #tpu.dot_dimension_numbers<[1], [0], [0], [1], [0, 0, 1, 1], [], []>} : vector<8x44xf32>, vector<44x96xf32>, vector<8x96xf32> -> vector<8x96xf32>
    %c48 = arith.constant 48 : index
    %c0_3 = arith.constant 0 : index
    %7 = vector.load %arg2[%c48, %c0_3] : memref<320x128xf32, #tpu.memory_space<vmem>>, vector<1x96xf32>
    %8 = vector.broadcast %7 : vector<1x96xf32> to vector<8x96xf32>
    %9 = arith.addf %6, %8 : vector<8x96xf32>
    %10 = vector.extract_strided_slice %9 {offsets = [0, 0], sizes = [8, 23], strides = [1, 1]} : vector<8x96xf32> to vector<8x23xf32>
    %cst_4 = arith.constant 0.000000e+00 : f32
    %11 = vector.broadcast %cst_4 : f32 to vector<8x23xf32>
    %12 = arith.subf %11, %10 : vector<8x23xf32>
    %13 = math.exp %12 : vector<8x23xf32>
    %cst_5 = arith.constant 1.000000e+00 : f32
    %14 = vector.broadcast %cst_5 : f32 to vector<8x23xf32>
    %15 = arith.addf %14, %13 : vector<8x23xf32>
    %cst_6 = arith.constant 1.000000e+00 : f32
    %16 = vector.broadcast %cst_6 : f32 to vector<8x23xf32>
    %17 = arith.divf %16, %15 : vector<8x23xf32>
    %18 = vector.extract_strided_slice %9 {offsets = [0, 24], sizes = [8, 23], strides = [1, 1]} : vector<8x96xf32> to vector<8x23xf32>
    %cst_7 = arith.constant 0.000000e+00 : f32
    %19 = vector.broadcast %cst_7 : f32 to vector<8x23xf32>
    %20 = arith.subf %19, %18 : vector<8x23xf32>
    %21 = math.exp %20 : vector<8x23xf32>
    %cst_8 = arith.constant 1.000000e+00 : f32
    %22 = vector.broadcast %cst_8 : f32 to vector<8x23xf32>
    %23 = arith.addf %22, %21 : vector<8x23xf32>
    %cst_9 = arith.constant 1.000000e+00 : f32
    %24 = vector.broadcast %cst_9 : f32 to vector<8x23xf32>
    %25 = arith.divf %24, %23 : vector<8x23xf32>
    %26 = vector.extract_strided_slice %9 {offsets = [0, 48], sizes = [8, 23], strides = [1, 1]} : vector<8x96xf32> to vector<8x23xf32>
    %27 = vector.extract_strided_slice %9 {offsets = [0, 72], sizes = [8, 23], strides = [1, 1]} : vector<8x96xf32> to vector<8x23xf32>
    %28 = arith.mulf %17, %27 : vector<8x23xf32>
    %29 = arith.addf %26, %28 : vector<8x23xf32>
    %30 = math.tanh %29 : vector<8x23xf32>
    %cst_10 = arith.constant 1.000000e+00 : f32
    %31 = vector.broadcast %cst_10 : f32 to vector<8x23xf32>
    %32 = arith.subf %31, %25 : vector<8x23xf32>
    %33 = arith.mulf %32, %30 : vector<8x23xf32>
    %34 = arith.mulf %25, %3 : vector<8x23xf32>
    %35 = arith.addf %33, %34 : vector<8x23xf32>
    %c80 = arith.constant 80 : index
    %c0_11 = arith.constant 0 : index
    %36 = vector.load %arg2[%c80, %c0_11] : memref<320x128xf32, #tpu.memory_space<vmem>>, vector<8x32xf32>
    %cst_12 = arith.constant dense<0.000000e+00> : vector<8x32xf32>
    %37 = tpu.matmul %4, %36, %cst_12 {dimension_numbers = #tpu.dot_dimension_numbers<[1], [0], [0], [1], [0, 0, 1, 1], [], []>} : vector<8x8xf32>, vector<8x32xf32>, vector<8x32xf32> -> vector<8x32xf32>
    %c88 = arith.constant 88 : index
    %c0_13 = arith.constant 0 : index
    %38 = vector.load %arg2[%c88, %c0_13] : memref<320x128xf32, #tpu.memory_space<vmem>>, vector<1x32xf32>
    %39 = vector.broadcast %38 : vector<1x32xf32> to vector<8x32xf32>
    %40 = arith.addf %37, %39 : vector<8x32xf32>
    %c56 = arith.constant 56 : index
    %c0_14 = arith.constant 0 : index
    %41 = vector.load %arg2[%c56, %c0_14] : memref<320x128xf32, #tpu.memory_space<vmem>>, vector<23x32xf32>
    %cst_15 = arith.constant dense<0.000000e+00> : vector<8x32xf32>
    %42 = tpu.matmul %35, %41, %cst_15 {dimension_numbers = #tpu.dot_dimension_numbers<[1], [0], [0], [1], [0, 0, 1, 1], [], []>} : vector<8x23xf32>, vector<23x32xf32>, vector<8x32xf32> -> vector<8x32xf32>
    %43 = arith.addf %42, %40 : vector<8x32xf32>
    %44 = vector.extract_strided_slice %43 {offsets = [0, 0], sizes = [8, 8], strides = [1, 1]} : vector<8x32xf32> to vector<8x8xf32>
    %cst_16 = arith.constant 0.000000e+00 : f32
    %45 = vector.broadcast %cst_16 : f32 to vector<8x8xf32>
    %46 = arith.subf %45, %44 : vector<8x8xf32>
    %47 = math.exp %46 : vector<8x8xf32>
    %cst_17 = arith.constant 1.000000e+00 : f32
    %48 = vector.broadcast %cst_17 : f32 to vector<8x8xf32>
    %49 = arith.addf %48, %47 : vector<8x8xf32>
    %cst_18 = arith.constant 1.000000e+00 : f32
    %50 = vector.broadcast %cst_18 : f32 to vector<8x8xf32>
    %51 = arith.divf %50, %49 : vector<8x8xf32>
    %52 = vector.extract_strided_slice %43 {offsets = [0, 8], sizes = [8, 8], strides = [1, 1]} : vector<8x32xf32> to vector<8x8xf32>
    %cst_19 = arith.constant 0.000000e+00 : f32
    %53 = vector.broadcast %cst_19 : f32 to vector<8x8xf32>
    %54 = arith.subf %53, %52 : vector<8x8xf32>
    %55 = math.exp %54 : vector<8x8xf32>
    %cst_20 = arith.constant 1.000000e+00 : f32
    %56 = vector.broadcast %cst_20 : f32 to vector<8x8xf32>
    %57 = arith.addf %56, %55 : vector<8x8xf32>
    %cst_21 = arith.constant 1.000000e+00 : f32
    %58 = vector.broadcast %cst_21 : f32 to vector<8x8xf32>
    %59 = arith.divf %58, %57 : vector<8x8xf32>
    %60 = vector.extract_strided_slice %43 {offsets = [0, 16], sizes = [8, 8], strides = [1, 1]} : vector<8x32xf32> to vector<8x8xf32>
    %61 = vector.extract_strided_slice %43 {offsets = [0, 24], sizes = [8, 8], strides = [1, 1]} : vector<8x32xf32> to vector<8x8xf32>
    %62 = arith.mulf %51, %61 : vector<8x8xf32>
    %63 = arith.addf %60, %62 : vector<8x8xf32>
    %64 = math.tanh %63 : vector<8x8xf32>
    %cst_22 = arith.constant 1.000000e+00 : f32
    %65 = vector.broadcast %cst_22 : f32 to vector<8x8xf32>
    %66 = arith.subf %65, %59 : vector<8x8xf32>
    %67 = arith.mulf %66, %64 : vector<8x8xf32>
    %68 = arith.mulf %59, %4 : vector<8x8xf32>
    %69 = arith.addf %67, %68 : vector<8x8xf32>
    %cst_23 = arith.constant 0.000000e+00 : f32
    %70 = vector.broadcast %cst_23 : f32 to vector<8x8xf32>
    %71 = arith.cmpf ogt, %69, %70 : vector<8x8xf32>
    %cst_24 = arith.constant 0.000000e+00 : f32
    %72 = vector.broadcast %cst_24 : f32 to vector<8x8xf32>
    %73 = arith.minimumf %69, %72 : vector<8x8xf32>
    %74 = math.exp %73 : vector<8x8xf32>
    %cst_25 = arith.constant 1.000000e+00 : f32
    %75 = vector.broadcast %cst_25 : f32 to vector<8x8xf32>
    %76 = arith.subf %74, %75 : vector<8x8xf32>
    %77 = arith.select %71, %69, %76 : vector<8x8xi1>, vector<8x8xf32>
    %c96 = arith.constant 96 : index
    %c0_26 = arith.constant 0 : index
    %78 = vector.load %arg2[%c96, %c0_26] : memref<320x128xf32, #tpu.memory_space<vmem>>, vector<8x1xf32>
    %cst_27 = arith.constant dense<0.000000e+00> : vector<8x1xf32>
    %79 = tpu.matmul %77, %78, %cst_27 {dimension_numbers = #tpu.dot_dimension_numbers<[1], [0], [0], [1], [0, 0, 1, 1], [], []>} : vector<8x8xf32>, vector<8x1xf32>, vector<8x1xf32> -> vector<8x1xf32>
    %c104 = arith.constant 104 : index
    %c0_28 = arith.constant 0 : index
    %80 = vector.load %arg2[%c104, %c0_28] : memref<320x128xf32, #tpu.memory_space<vmem>>, vector<1x1xf32>
    %81 = vector.broadcast %80 : vector<1x1xf32> to vector<8x1xf32>
    %82 = arith.addf %79, %81 : vector<8x1xf32>
    %83 = math.exp %82 : vector<8x1xf32>
    %cst_29 = arith.constant 0.000000e+00 : f32
    %84 = vector.broadcast %cst_29 : f32 to vector<8x1xf32>
    %85 = arith.subf %84, %83 : vector<8x1xf32>
    %c0_30 = arith.constant 0 : index
    %c0_31 = arith.constant 0 : index
    %86 = vector.load %arg1[%c0_30, %c0_31] : memref<8x8xf32, #tpu.memory_space<vmem>>, vector<8x8xf32>
    %cst_32 = arith.constant dense<0.000000e+00> : vector<8x8xf32>
    %87 = tpu.matmul %1, %86, %cst_32 {dimension_numbers = #tpu.dot_dimension_numbers<[1], [1], [0], [0], [0, 0, 1, 0], [], []>} : vector<8x8xf32>, vector<8x8xf32>, vector<8x8xf32> -> vector<8x8xf32>
    %cst_33 = arith.constant 1.250000e-01 : f32
    %88 = vector.broadcast %cst_33 : f32 to vector<8x8xf32>
    %89 = arith.mulf %87, %88 : vector<8x8xf32>
    %c176 = arith.constant 176 : index
    %c0_34 = arith.constant 0 : index
    %90 = vector.load %arg2[%c176, %c0_34] : memref<320x128xf32, #tpu.memory_space<vmem>>, vector<13x96xf32>
    %cst_35 = arith.constant dense<0.000000e+00> : vector<8x96xf32>
    %91 = tpu.matmul %2, %90, %cst_35 {dimension_numbers = #tpu.dot_dimension_numbers<[1], [0], [0], [1], [0, 0, 1, 1], [], []>} : vector<8x13xf32>, vector<13x96xf32>, vector<8x96xf32> -> vector<8x96xf32>
    %c192 = arith.constant 192 : index
    %c0_36 = arith.constant 0 : index
    %92 = vector.load %arg2[%c192, %c0_36] : memref<320x128xf32, #tpu.memory_space<vmem>>, vector<1x96xf32>
    %93 = vector.broadcast %92 : vector<1x96xf32> to vector<8x96xf32>
    %94 = arith.addf %91, %93 : vector<8x96xf32>
    %cst_37 = arith.constant 0.000000e+00 : f32
    %95 = vector.broadcast %cst_37 : f32 to vector<8x96xf32>
    %96 = arith.cmpf ogt, %94, %95 : vector<8x96xf32>
    %cst_38 = arith.constant 0.000000e+00 : f32
    %97 = vector.broadcast %cst_38 : f32 to vector<8x96xf32>
    %98 = arith.minimumf %94, %97 : vector<8x96xf32>
    %99 = math.exp %98 : vector<8x96xf32>
    %cst_39 = arith.constant 1.000000e+00 : f32
    %100 = vector.broadcast %cst_39 : f32 to vector<8x96xf32>
    %101 = arith.subf %99, %100 : vector<8x96xf32>
    %102 = arith.select %96, %94, %101 : vector<8x96xi1>, vector<8x96xf32>
    %c200 = arith.constant 200 : index
    %c0_40 = arith.constant 0 : index
    %103 = vector.load %arg2[%c200, %c0_40] : memref<320x128xf32, #tpu.memory_space<vmem>>, vector<96x96xf32>
    %cst_41 = arith.constant dense<0.000000e+00> : vector<8x96xf32>
    %104 = tpu.matmul %102, %103, %cst_41 {dimension_numbers = #tpu.dot_dimension_numbers<[1], [0], [0], [1], [0, 0, 1, 1], [], []>} : vector<8x96xf32>, vector<96x96xf32>, vector<8x96xf32> -> vector<8x96xf32>
    %c296 = arith.constant 296 : index
    %c0_42 = arith.constant 0 : index
    %105 = vector.load %arg2[%c296, %c0_42] : memref<320x128xf32, #tpu.memory_space<vmem>>, vector<1x96xf32>
    %106 = vector.broadcast %105 : vector<1x96xf32> to vector<8x96xf32>
    %107 = arith.addf %104, %106 : vector<8x96xf32>
    %cst_43 = arith.constant 0.000000e+00 : f32
    %108 = vector.broadcast %cst_43 : f32 to vector<8x96xf32>
    %109 = arith.cmpf ogt, %107, %108 : vector<8x96xf32>
    %cst_44 = arith.constant 0.000000e+00 : f32
    %110 = vector.broadcast %cst_44 : f32 to vector<8x96xf32>
    %111 = arith.minimumf %107, %110 : vector<8x96xf32>
    %112 = math.exp %111 : vector<8x96xf32>
    %cst_45 = arith.constant 1.000000e+00 : f32
    %113 = vector.broadcast %cst_45 : f32 to vector<8x96xf32>
    %114 = arith.subf %112, %113 : vector<8x96xf32>
    %115 = arith.select %109, %107, %114 : vector<8x96xi1>, vector<8x96xf32>
    %c304 = arith.constant 304 : index
    %c0_46 = arith.constant 0 : index
    %116 = vector.load %arg2[%c304, %c0_46] : memref<320x128xf32, #tpu.memory_space<vmem>>, vector<8x96xf32>
    %cst_47 = arith.constant dense<0.000000e+00> : vector<8x8xf32>
    %117 = tpu.matmul %115, %116, %cst_47 {dimension_numbers = #tpu.dot_dimension_numbers<[1], [1], [0], [0], [0, 0, 1, 0], [], []>} : vector<8x96xf32>, vector<8x96xf32>, vector<8x8xf32> -> vector<8x8xf32>
    %c312 = arith.constant 312 : index
    %c0_48 = arith.constant 0 : index
    %118 = vector.load %arg2[%c312, %c0_48] : memref<320x128xf32, #tpu.memory_space<vmem>>, vector<1x8xf32>
    %119 = vector.broadcast %118 : vector<1x8xf32> to vector<8x8xf32>
    %120 = arith.addf %117, %119 : vector<8x8xf32>
    %c112 = arith.constant 112 : index
    %c0_49 = arith.constant 0 : index
    %121 = vector.load %arg2[%c112, %c0_49] : memref<320x128xf32, #tpu.memory_space<vmem>>, vector<13x8xf32>
    %cst_50 = arith.constant dense<0.000000e+00> : vector<8x8xf32>
    %122 = tpu.matmul %2, %121, %cst_50 {dimension_numbers = #tpu.dot_dimension_numbers<[1], [0], [0], [1], [0, 0, 1, 1], [], []>} : vector<8x13xf32>, vector<13x8xf32>, vector<8x8xf32> -> vector<8x8xf32>
    %c128 = arith.constant 128 : index
    %c0_51 = arith.constant 0 : index
    %123 = vector.load %arg2[%c128, %c0_51] : memref<320x128xf32, #tpu.memory_space<vmem>>, vector<1x8xf32>
    %124 = vector.broadcast %123 : vector<1x8xf32> to vector<8x8xf32>
    %125 = arith.addf %122, %124 : vector<8x8xf32>
    %cst_52 = arith.constant 0.000000e+00 : f32
    %126 = vector.broadcast %cst_52 : f32 to vector<8x8xf32>
    %127 = arith.cmpf ogt, %125, %126 : vector<8x8xf32>
    %cst_53 = arith.constant 0.000000e+00 : f32
    %128 = vector.broadcast %cst_53 : f32 to vector<8x8xf32>
    %129 = arith.minimumf %125, %128 : vector<8x8xf32>
    %130 = math.exp %129 : vector<8x8xf32>
    %cst_54 = arith.constant 1.000000e+00 : f32
    %131 = vector.broadcast %cst_54 : f32 to vector<8x8xf32>
    %132 = arith.subf %130, %131 : vector<8x8xf32>
    %133 = arith.select %127, %125, %132 : vector<8x8xi1>, vector<8x8xf32>
    %c136 = arith.constant 136 : index
    %c0_55 = arith.constant 0 : index
    %134 = vector.load %arg2[%c136, %c0_55] : memref<320x128xf32, #tpu.memory_space<vmem>>, vector<8x8xf32>
    %cst_56 = arith.constant dense<0.000000e+00> : vector<8x8xf32>
    %135 = tpu.matmul %133, %134, %cst_56 {dimension_numbers = #tpu.dot_dimension_numbers<[1], [0], [0], [1], [0, 0, 1, 1], [], []>} : vector<8x8xf32>, vector<8x8xf32>, vector<8x8xf32> -> vector<8x8xf32>
    %c144 = arith.constant 144 : index
    %c0_57 = arith.constant 0 : index
    %136 = vector.load %arg2[%c144, %c0_57] : memref<320x128xf32, #tpu.memory_space<vmem>>, vector<8x8xf32>
    %cst_58 = arith.constant dense<0.000000e+00> : vector<8x8xf32>
    %137 = tpu.matmul %1, %136, %cst_58 {dimension_numbers = #tpu.dot_dimension_numbers<[1], [0], [0], [1], [0, 0, 1, 1], [], []>} : vector<8x8xf32>, vector<8x8xf32>, vector<8x8xf32> -> vector<8x8xf32>
    %c152 = arith.constant 152 : index
    %c0_59 = arith.constant 0 : index
    %138 = vector.load %arg2[%c152, %c0_59] : memref<320x128xf32, #tpu.memory_space<vmem>>, vector<1x8xf32>
    %139 = vector.broadcast %138 : vector<1x8xf32> to vector<8x8xf32>
    %140 = arith.addf %137, %139 : vector<8x8xf32>
    %cst_60 = arith.constant 0.000000e+00 : f32
    %141 = vector.broadcast %cst_60 : f32 to vector<8x8xf32>
    %142 = arith.cmpf ogt, %140, %141 : vector<8x8xf32>
    %cst_61 = arith.constant 0.000000e+00 : f32
    %143 = vector.broadcast %cst_61 : f32 to vector<8x8xf32>
    %144 = arith.minimumf %140, %143 : vector<8x8xf32>
    %145 = math.exp %144 : vector<8x8xf32>
    %cst_62 = arith.constant 1.000000e+00 : f32
    %146 = vector.broadcast %cst_62 : f32 to vector<8x8xf32>
    %147 = arith.subf %145, %146 : vector<8x8xf32>
    %148 = arith.select %142, %140, %147 : vector<8x8xi1>, vector<8x8xf32>
    %c160 = arith.constant 160 : index
    %c0_63 = arith.constant 0 : index
    %149 = vector.load %arg2[%c160, %c0_63] : memref<320x128xf32, #tpu.memory_space<vmem>>, vector<8x8xf32>
    %cst_64 = arith.constant dense<0.000000e+00> : vector<8x8xf32>
    %150 = tpu.matmul %148, %149, %cst_64 {dimension_numbers = #tpu.dot_dimension_numbers<[1], [0], [0], [1], [0, 0, 1, 1], [], []>} : vector<8x8xf32>, vector<8x8xf32>, vector<8x8xf32> -> vector<8x8xf32>
    %c168 = arith.constant 168 : index
    %c0_65 = arith.constant 0 : index
    %151 = vector.load %arg2[%c168, %c0_65] : memref<320x128xf32, #tpu.memory_space<vmem>>, vector<1x8xf32>
    %152 = vector.broadcast %151 : vector<1x8xf32> to vector<8x8xf32>
    %153 = arith.addf %150, %152 : vector<8x8xf32>
    %cst_66 = arith.constant 0.000000e+00 : f32
    %154 = vector.broadcast %cst_66 : f32 to vector<8x8xf32>
    %155 = arith.subf %154, %153 : vector<8x8xf32>
    %156 = math.exp %155 : vector<8x8xf32>
    %cst_67 = arith.constant 1.000000e+00 : f32
    %157 = vector.broadcast %cst_67 : f32 to vector<8x8xf32>
    %158 = arith.addf %157, %156 : vector<8x8xf32>
    %cst_68 = arith.constant 1.000000e+00 : f32
    %159 = vector.broadcast %cst_68 : f32 to vector<8x8xf32>
    %160 = arith.divf %159, %158 : vector<8x8xf32>
    %cst_69 = arith.constant 9.99999974E-6 : f32
    %161 = vector.broadcast %cst_69 : f32 to vector<8x8xf32>
    %162 = arith.addf %160, %161 : vector<8x8xf32>
    %163 = arith.addf %89, %120 : vector<8x8xf32>
    %164 = arith.addf %163, %135 : vector<8x8xf32>
    %cst_70 = arith.constant 0.000000e+00 : f32
    %165 = vector.broadcast %cst_70 : f32 to vector<8x79xf32>
    %166 = tpu.concatenate %164, %162, %69, %35, %82, %85, %165 in 1 : vector<8x8xf32>, vector<8x8xf32>, vector<8x8xf32>, vector<8x23xf32>, vector<8x1xf32>, vector<8x1xf32>, vector<8x79xf32> -> vector<8x128xf32>
    %c0_71 = arith.constant 0 : index
    %c0_72 = arith.constant 0 : index
    %167 = vector.load %arg3[%c0_71, %c0_72] : memref<8x128xf32, #tpu.memory_space<vmem>>, vector<8x128xf32>
    tpu.vector_store %arg3[%c0_71, %c0_72], %166 {strides = array<i32>} : memref<8x128xf32, #tpu.memory_space<vmem>>, vector<8x128xf32>,
    return
  }
}

</mosaic_0001>

<bundles_post_ra>
// kernel: forward.1
= control target key start
LH: loop header
LB: loop body
LE: loop exit
PB: predicated region body
PF: predicated region fallthrough
CT: control target
= control target key end

     0   :  { %8 = vsyncpa [#allocation3], 0  ;;  %s649_s15 = smov [#allocation2]   ;;  %s650_s17 = smov 128   ;;  %s734_s0 = inlined_call_operand.vmem [shape: f32[8,44], index: 0, kind: input, shape index: {}]   ;;  %s735_s1 = inlined_call_operand.vmem [shape: f32[8,8], index: 1, kind: input, shape index: {}]   ;;  %s736_s2 = inlined_call_operand.hbm [shape: f32[320,128], index: 2, kind: input, shape index: {}]   ;;  %s737_s3 = inlined_call_operand.vmem [shape: f32[8,128], index: 3, kind: output, shape index: {}]  }
   0x1   :  { %s17_s14 = sshll.u32 %s736_s2, 4  ;;  %s19_s16 = sshll.u32 %s649_s15, 4  ;;  %s18_s14 = int_to_ptr.hbm [resolvable:$true] %s17_s14  ;;  %s20_s16 = int_to_ptr.vmem [resolvable:$true] %s19_s16 }
   0x2   :  { %s651_s18 = smov 8  }
   0x3   :  { %25 = dma.hbm_to_vmem [thread:$0]  %s18_s14, 5120, %s20_s16, [#allocation3], %s650_s17, %s650_s17, %s651_s18  }
   0x4   :  { %647 = dma.done.wait [#allocation3], 5120  }
   0x5   :  { %648 = vsyncadd [#allocation3], 4294962176  ;;  %vm43_vm0 = vcmask 1043456   ;;  %v36_v0 = vld [vmem:[#allocation2 + $0x28] sm:$0xf]  ;;  %v35_v1 = vld [vmem:[#allocation2 + $0x20] sm:$0xff] }
   0x6   :  { %551 = vmatpush.msk.msra.mxu0 %vm43_vm0, %v36_v0  ;;  %v34_v2 = vld [vmem:[#allocation2 + $0x18] sm:$0xff]  ;;  %v33_v3 = vld [vmem:[#allocation2 + $0x10] sm:$0xff]  ;;  %v32_v4 = vld [vmem:[#allocation2 + $0x8] sm:$0xff]  ;;  %vm39_vm1 = vcmask 359424   ;;  %s652_s20 = smov 56   ;;  %s654_s21 = smov 92  }
   0x7   :  { %v31_v5 = vld [vmem:[#allocation2] sm:$0xff]  ;;  %v586_v7 = vld [vmem:[#allocation2 + $0x30] ss:$0 sm:$0xff]  ;;  %s655_s22 = smov 104   ;;  %s656_s23 = smov 11   ;;  %vm113_vm6 = vcmask 64512  }
   0x8   :  { %58 = vmatpush.msra.mxu0 %v35_v1  ;;  %v688_v6 = vld [vmem:[%s734_s0] sm:$0xff]  ;;  %s653_s0 = smov 48   ;;  %v108_v29 = vld [vmem:[#allocation2 + $0x50] sm:$0xff]  ;;  %v138_v31 = vld [vmem:[#allocation2 + $0x48] sm:$0x7f]  ;;  %vm145_vm7 = vcmask 1046528  }
   0x9   :  { %111 = vrot.lane.b32.xlu2 %v688_v6, %s654_s21  ;;  %v137_v32 = vld [vmem:[#allocation2 + $0x40] sm:$0xff]  ;;  %131 = vmatpush.msra.mxu1 %v108_v29  ;;  %v136_v33 = vld [vmem:[#allocation2 + $0x38] sm:$0xff]  ;;  %vm142_vm8 = vcmask 187392   ;;  %s657_s24 = smov 100   ;;  %s658_s25 = smov 16   ;;  %vm281_vm14 = vcmask 1044480  }
   0xa   :  { %59 = vmatpush.msra.mxu0 %v34_v2  ;;  %v587_v41 = vld [vmem:[#allocation2 + $0x58] ss:$0 sm:$0xff]  ;;  %s659_s26 = smov 120   ;;  %vm278_vm15 = vcmask 105472   ;;  %s660_s27 = smov 47   ;;  %vm325_vm0 = vcmask 785408  }
   0xb   :  { %v385_v29 = vld [vmem:[#allocation2 + $0x78] sm:$0x1f] }
   0xc   :  { %60 = vmatpush.msra.mxu0 %v33_v3 }
   0xe   :  { %61 = vmatpush.msra.mxu0 %v32_v4 }
  0x10   :  { %62 = vmatpush.msra.mxu0 %v31_v5 }
  0x11   :  { %552 = vmatmul.msk.f32.vlgmr.msra.gmra.mxu0 %vm39_vm1, %v688_v6 }
  0x12   :  { %554 = vmatpush.msk.msrb.mxu0 %vm145_vm7, %v138_v31  ;;  %v588_v31 = vld [vmem:[#allocation2 + $0x68] ss:$0 sm:$0xff] }
  0x14   :  { %163 = vmatpush.msrb.mxu0 %v137_v32 }
  0x16   :  { %164 = vmatpush.msrb.mxu0 %v136_v33 }
  0x63   :  { %v112_v30 = vpop.permute.xlu2 %111 }
  0x64   :  { %553 = vmatmul.msk.f32.vlgmr.msra.gmra.mxu1 %vm113_vm6, %v112_v30  ;;  %v384_v30 = vld [vmem:[#allocation2 + $0x70] sm:$0xff] }
  0x8e   :  { %v64_v8 = vpop.f32.mrf.mxu0 }
  0x8f   :  { %v65_v9 = vadd.f32 %v586_v7, %v64_v8 }
  0x91   :  { %87 = vrot.lane.b32.xlu0 %v65_v9, %s652_s20  ;;  %v67_v10 = vsub.f32 0.0, %v65_v9 }
  0x93   :  { %v68_v11 = vmul.f32 1.442695, %v67_v10 }
  0x95   :  { %595 = vpow2.f32 %v68_v11 }
  0x9b   :  { %v596_v12 = vpop.eup %595 }
  0x9c   :  { %v70_v13 = vadd.f32 1.0, %v596_v12 }
  0x9e   :  { %597 = vrcp.f32 %v70_v13  ;;  %v82_v19 = vand.u32 2147483648, %v70_v13  ;;  %vm76_vm3 = vweird.f32 %v70_v13  ;;  %v80_v20 = vand.u32 2147483647, %v70_v13 }
  0xa0   :  { %v83_v22 = vor.u32 1.1754944e-38, %v82_v19  ;;  %vm81_vm5 = vcmp.eq.f32.partialorder %v80_v20, 8.507059e+37  ;;  %v320_v19 = vld [vmem:[#allocation2 + $0x110] sm:$0xff]  ;;  %v319_v20 = vld [vmem:[#allocation2 + $0x108] sm:$0xff] }
  0xa4   :  { %v598_v14 = vpop.eup %597 }
  0xa5   :  { %v72_v15 = vmul.f32 %v598_v14, %v70_v13  ;;  %vm77_vm2 = vweird.f32 %v598_v14  ;;  %v216_v13 = vld [vmem:[#allocation2 + $0x60] sm:$0xff] }
  0xa6   :  { %vm78_vm4 = vmor %vm76_vm3, %vm77_vm2  ;;  %239 = vmatpush.msra.mxu3 %v216_v13 }
  0xa7   :  { %v73_v16 = vsub.f32 1.0, %v72_v15  ;;  %v274_v15 = vld [vmem:[#allocation2 + $0xb0] sm:$0xff] }
  0xa9   :  { %v74_v17 = vmul.f32 %v598_v14, %v73_v16 }
  0xab   :  { %v75_v18 = vadd.f32 %v598_v14, %v74_v17  ;;  %v322_v17 = vld [vmem:[#allocation2 + $0x120] sm:$0xff] }
  0xac   :  { %333 = vmatpush.msra.mxu2 %v322_v17 }
  0xad   :  { %v79_v21 = vsel %vm78_vm4, %v598_v14, %v75_v18  ;;  %v275_v14 = vld [vmem:[#allocation2 + $0xb8] sm:$0x1f] }
  0xae   :  { %v84_v24 = vsel %vm81_vm5, %v83_v22, %v79_v21  ;;  %560 = vmatpush.msk.msrb.mxu3 %vm281_vm14, %v275_v14  ;;  %v321_v18 = vld [vmem:[#allocation2 + $0x118] sm:$0xff]  ;;  %v318_v21 = vld [vmem:[#allocation2 + $0x100] sm:$0xff] }
  0xaf   :  { %v97_v35 = vsub.f32 1.0, %v84_v24  ;;  %334 = vmatpush.msra.mxu2 %v321_v18  ;;  %v317_v22 = vld [vmem:[#allocation2 + $0xf8] sm:$0xff] }
  0xb0   :  { %300 = vmatpush.msrb.mxu3 %v274_v15 }
  0xb1   :  { %335 = vmatpush.msra.mxu2 %v320_v19 }
  0xb3   :  { %336 = vmatpush.msra.mxu2 %v319_v20 }
  0xb5   :  { %337 = vmatpush.msra.mxu2 %v318_v21 }
  0xb7   :  { %338 = vmatpush.msra.mxu2 %v317_v22 }
  0xe1   :  { %v133_v42 = vpop.f32.mrf.mxu1 }
  0xe2   :  { %v134_v43 = vadd.f32 %v587_v41, %v133_v42 }
 0x103   :  { %v88_v23 = vpop.permute.xlu0 %87 }
 0x104   :  { %v90_v25 = vmul.f32 %v88_v23, %v84_v24  ;;  %v316_v23 = vld [vmem:[#allocation2 + $0xf0] sm:$0xff] }
 0x105   :  { %339 = vmatpush.msra.mxu2 %v316_v23 }
 0x106   :  { %92 = vrot.lane.b32.xlu0 %v90_v25, %s653_s0  ;;  %v314_v25 = vld [vmem:[#allocation2 + $0xe0] sm:$0xff] }
 0x178   :  { %v93_v26 = vpop.permute.xlu0 %92 }
 0x179   :  { %v95_v27 = vadd.f32 %v93_v26, %v65_v9  ;;  %v313_v26 = vld [vmem:[#allocation2 + $0xd8] sm:$0xff] }
 0x17b   :  { %599 = vtanh.f32 %v95_v27  ;;  %v312_v27 = vld [vmem:[#allocation2 + $0xd0] sm:$0xff] }
 0x181   :  { %v600_v28 = vpop.eup %599 }
 0x182   :  { %99 = vrot.lane.b32.xlu1 %v600_v28, %s655_s22  ;;  %v311_v28 = vld [vmem:[#allocation2 + $0xc8] sm:$0xff] }
 0x18a   :  { %103 = vrot.lane.b32.xlu1 %v688_v6, %s656_s23 }
 0x1f4   :  { %v100_v34 = vpop.permute.xlu1 %99 }
 0x1f5   :  { %v102_v37 = vmul.f32 %v100_v34, %v97_v35  ;;  %v589_v34 = vld [vmem:[#allocation2 + $0xc0] ss:$0 sm:$0xff] }
 0x1fc   :  { %v104_v36 = vpop.permute.xlu1 %103 }
 0x1fd   :  { %v106_v38 = vmul.f32 %v104_v36, %v84_v24  ;;  %v315_v24 = vld [vmem:[#allocation2 + $0xe8] sm:$0xff] }
 0x1fe   :  { %340 = vmatpush.msra.mxu2 %v315_v24 }
 0x1ff   :  { %v696_v39 = vadd.f32 %v106_v38, %v102_v37 }
 0x200   :  { %341 = vmatpush.msra.mxu2 %v314_v25 }
 0x201   :  { %140 = vrot.lane.b32.xlu2 %v696_v39, %s655_s22 }
 0x202   :  { %342 = vmatpush.msra.mxu2 %v313_v26 }
 0x204   :  { %343 = vmatpush.msra.mxu2 %v312_v27 }
 0x206   :  { %344 = vmatpush.msra.mxu2 %v311_v28 }
 0x25b   :  { %v141_v40 = vpop.permute.xlu2 %140 }
 0x25c   :  { %555 = vmatmul.msk.f32.vlgmr.msrb.gmra.mxu0 %vm142_vm8, %v141_v40 }
 0x2d9   :  { %v166_v44 = vpop.f32.mrf.mxu0 }
 0x2da   :  { %v167_v45 = vadd.f32 %v166_v44, %v134_v43  ;;  %v591_v43 = vld [vmem:[#allocation2 + $0x80] ss:$0 sm:$0xff] }
 0x2dc   :  { %189 = vrot.lane.b32.xlu0 %v167_v45, %s655_s22  ;;  %v169_v46 = vsub.f32 0.0, %v167_v45 }
 0x2de   :  { %v170_v47 = vmul.f32 1.442695, %v169_v46 }
 0x2e0   :  { %601 = vpow2.f32 %v170_v47 }
 0x2e4   :  { %205 = vrot.lane.b32.xlu0 %v688_v6, %s657_s24 }
 0x2e6   :  { %v602_v48 = vpop.eup %601 }
 0x2e7   :  { %v172_v49 = vadd.f32 1.0, %v602_v48 }
 0x2e9   :  { %603 = vrcp.f32 %v172_v49  ;;  %v184_v55 = vand.u32 2147483648, %v172_v49  ;;  %vm178_vm10 = vweird.f32 %v172_v49  ;;  %v182_v56 = vand.u32 2147483647, %v172_v49 }
 0x2eb   :  { %v185_v58 = vor.u32 1.1754944e-38, %v184_v55  ;;  %vm183_vm12 = vcmp.eq.f32.partialorder %v182_v56, 8.507059e+37  ;;  %v590_v55 = vld [vmem:[#allocation2 + $0x128] ss:$0 sm:$0xff] }
 0x2ef   :  { %v604_v50 = vpop.eup %603 }
 0x2f0   :  { %v174_v51 = vmul.f32 %v604_v50, %v172_v49  ;;  %vm179_vm9 = vweird.f32 %v604_v50  ;;  %v355_v49 = vld [vmem:[#allocation2 + $0x130] sm:$0xff] }
 0x2f1   :  { %vm180_vm11 = vmor %vm178_vm10, %vm179_vm9  ;;  %vm535_vm10 = vcmask 130048  }
 0x2f2   :  { %v175_v52 = vsub.f32 1.0, %v174_v51  ;;  %v441_v51 = vld [vmem:[#allocation2 + $0x90] sm:$0xff] }
 0x2f4   :  { %v176_v53 = vmul.f32 %v604_v50, %v175_v52  ;;  %v417_v52 = vld [vmem:[#allocation2 + $0x88] sm:$0xff] }
 0x2f5   :  { %436 = vmatpush.msra.mxu0 %v417_v52 }
 0x2f6   :  { %v177_v54 = vadd.f32 %v604_v50, %v176_v53 }
 0x2f8   :  { %v181_v57 = vsel %vm180_vm11, %v604_v50, %v177_v54  ;;  %vm537_vm11 = vcmask 195584  }
 0x2f9   :  { %v186_v60 = vsel %vm183_vm12, %v185_v58, %v181_v57  ;;  %vm539_vm12 = vcmask 384000  }
 0x2fa   :  { %v199_v2 = vsub.f32 1.0, %v186_v60 }
 0x34e   :  { %v190_v59 = vpop.permute.xlu0 %189 }
 0x34f   :  { %v192_v61 = vmul.f32 %v190_v59, %v186_v60 }
 0x351   :  { %194 = vrot.lane.b32.xlu1 %v192_v61, %s658_s25 }
 0x356   :  { %v206_v1 = vpop.permute.xlu0 %205 }
 0x357   :  { %v208_v4 = vmul.f32 %v206_v1, %v186_v60  ;;  %v592_v1 = vld [vmem:[#allocation2 + $0x138] ss:$0 sm:$0xff] }
 0x3c3   :  { %v195_v62 = vpop.permute.xlu1 %194 }
 0x3c4   :  { %v197_v63 = vadd.f32 %v195_v62, %v167_v45  ;;  %v247_v45 = vld [vmem:[%s735_s1] sm:$0xff] }
 0x3c5   :  { %558 = vmatpush.xpose.msk.msrb.mxu1 %vm113_vm6, %v247_v45 }
 0x3c6   :  { %605 = vtanh.f32 %v197_v63 }
 0x3c8   :  { %559 = vmatmul.msk.f32.vlgmr.msrb.gmra.mxu1 %vm113_vm6, %v688_v6 }
 0x3c9   :  { %565 = vmatpush.xpose.msk.msra.mxu1 %vm325_vm0, %v355_v49 }
 0x3cc   :  { %v606_v0 = vpop.eup %605 }
 0x3cd   :  { %201 = vrot.lane.b32.xlu2 %v606_v0, %s659_s26  ;;  %459 = vmatpush.msrb.mxu1 %v441_v51  ;;  %v470_v0 = vld [vmem:[#allocation2 + $0xa0] sm:$0xff] }
 0x427   :  { %v202_v3 = vpop.permute.xlu2 %201 }
 0x428   :  { %v204_v5 = vmul.f32 %v202_v3, %v199_v2 }
 0x42a   :  { %v209_v7 = vadd.f32 %v208_v4, %v204_v5 }
 0x42c   :  { %523 = vrot.lane.b32.xlu0 %v209_v7, %s651_s18  ;;  %v211_v8 = vmin.f32 %v209_v7, 0.0  ;;  %vm210_vm13 = vcmp.gt.f32.partialorder %v209_v7, 0.0 }
 0x42e   :  { %v212_v9 = vmul.f32 1.442695, %v211_v8 }
 0x430   :  { %607 = vpow2.f32 %v212_v9 }
 0x436   :  { %v608_v10 = vpop.eup %607 }
 0x437   :  { %v556_v11 = vadd.f32 -1.0, %v608_v10 }
 0x439   :  { %v215_v12 = vsel %vm210_vm13, %v209_v7, %v556_v11  ;;  %v593_v7 = vld [vmem:[#allocation2 + $0x98] ss:$0 sm:$0xff]  ;;  %vm541_vm13 = vcmask 392192  }
 0x43a   :  { %220 = vrot.lane.b32.xlu1 %v215_v12, %s659_s26 }
 0x445   :  { %v270_v63 = vpop.f32.mrf.mxu1 }
 0x446   :  { %v273_v3 = vmul.f32 0.125, %v270_v63 }
 0x4ac   :  { %v221_v16 = vpop.permute.xlu1 %220 }
 0x4ad   :  { %557 = vmatmul.msk.f32.vlgmr.msra.gmra.mxu3 %vm113_vm6, %v221_v16 }
 0x4ae   :  { %567 = vmatpush.msk.msra.mxu3 %vm281_vm14, %v385_v29  ;;  %vm543_vm14 = vcmask 400384  }
 0x4b0   :  { %406 = vmatpush.msra.mxu3 %v384_v30 }
 0x4b5   :  { %561 = vmatmul.msk.f32.vlgmr.msrb.gmra.mxu3 %vm278_vm15, %v688_v6 }
 0x4b6   :  { %491 = vmatpush.msrb.mxu3 %v470_v0 }
 0x4bd   :  { %568 = vmatmul.msk.f32.vlgmr.msra.gmra.mxu3 %vm278_vm15, %v688_v6 }
 0x530   :  { %v241_v32 = vpop.f32.mrf.mxu3 }
 0x531   :  { %v710_v33 = vadd.f32 %v588_v31, %v241_v32 }
 0x533   :  { %527 = vrot.lane.b32.xlu1 %v710_v33, %s660_s27  ;;  %v244_v27 = vmul.f32 1.442695, %v710_v33  ;;  %v524_v33 = vpop.permute.xlu0 %523 }
 0x538   :  { %v302_v35 = vpop.f32.mrf.mxu3 }
 0x539   :  { %v303_v36 = vadd.f32 %v589_v34, %v302_v35 }
 0x53b   :  { %v306_v37 = vmin.f32 %v303_v36, 0.0  ;;  %vm305_vm1 = vcmp.gt.f32.partialorder %v303_v36, 0.0 }
 0x53d   :  { %v307_v38 = vmul.f32 1.442695, %v306_v37 }
 0x53f   :  { %609 = vpow2.f32 %v307_v38 }
 0x540   :  { %v408_v44 = vpop.f32.mrf.mxu3 }
 0x541   :  { %v409_v46 = vadd.f32 %v591_v43, %v408_v44 }
 0x543   :  { %v412_v47 = vmin.f32 %v409_v46, 0.0  ;;  %vm411_vm2 = vcmp.gt.f32.partialorder %v409_v46, 0.0 }
 0x545   :  { %v610_v40 = vpop.eup %609  ;;  %v413_v48 = vmul.f32 1.442695, %v412_v47 }
 0x546   :  { %v562_v41 = vadd.f32 -1.0, %v610_v40 }
 0x547   :  { %611 = vpow2.f32 %v413_v48 }
 0x548   :  { %v310_v42 = vsel %vm305_vm1, %v303_v36, %v562_v41 }
 0x549   :  { %563 = vmatmul.msk.f32.vlgmr.msra.gmra.mxu2 %vm325_vm0, %v310_v42 }
 0x54d   :  { %v612_v50 = vpop.eup %611 }
 0x54e   :  { %v569_v53 = vadd.f32 -1.0, %v612_v50 }
 0x550   :  { %v416_v54 = vsel %vm411_vm2, %v409_v46, %v569_v53 }
 0x551   :  { %570 = vmatmul.msk.f32.vlgmr.msra.gmra.mxu0 %vm113_vm6, %v416_v54 }
 0x5a5   :  { %v528_v43 = vpop.permute.xlu1 %527 }
 0x5cc   :  { %v346_v56 = vpop.f32.mrf.mxu2 }
 0x5cd   :  { %v347_v57 = vadd.f32 %v590_v55, %v346_v56 }
 0x5ce   :  { %v438_v36 = vpop.f32.mrf.mxu0 }
 0x5cf   :  { %v350_v58 = vmin.f32 %v347_v57, 0.0  ;;  %vm349_vm3 = vcmp.gt.f32.partialorder %v347_v57, 0.0 }
 0x5d1   :  { %v351_v59 = vmul.f32 1.442695, %v350_v58 }
 0x5d3   :  { %613 = vpow2.f32 %v351_v59 }
 0x5d9   :  { %v614_v60 = vpop.eup %613 }
 0x5da   :  { %v564_v61 = vadd.f32 -1.0, %v614_v60 }
 0x5dc   :  { %v354_v62 = vsel %vm349_vm3, %v347_v57, %v564_v61 }
 0x5dd   :  { %566 = vmatmul.msk.f32.vlgmr.msra.gmra.mxu1 %vm325_vm0, %v354_v62 }
 0x5e5   :  { %571 = vmatmul.msk.f32.vlgmr.msrb.gmra.mxu1 %vm113_vm6, %v688_v6  ;;  %v594_v6 = vld [vmem:[#allocation2 + $0xa8] ss:$0 sm:$0xff] }
 0x65a   :  { %v381_v2 = vpop.f32.mrf.mxu1 }
 0x65b   :  { %v382_v4 = vadd.f32 %v592_v1, %v381_v2 }
 0x65d   :  { %v516_v5 = vadd.f32 %v382_v4, %v273_v3 }
 0x65f   :  { %v517_v37 = vadd.f32 %v516_v5, %v438_v36 }
 0x662   :  { %v461_v8 = vpop.f32.mrf.mxu1 }
 0x663   :  { %v462_v9 = vadd.f32 %v593_v7, %v461_v8 }
 0x665   :  { %v465_v10 = vmin.f32 %v462_v9, 0.0  ;;  %vm464_vm4 = vcmp.gt.f32.partialorder %v462_v9, 0.0 }
 0x667   :  { %v466_v11 = vmul.f32 1.442695, %v465_v10 }
 0x669   :  { %615 = vpow2.f32 %v466_v11 }
 0x66f   :  { %v616_v12 = vpop.eup %615 }
 0x670   :  { %v572_v13 = vadd.f32 -1.0, %v616_v12 }
 0x672   :  { %v469_v14 = vsel %vm464_vm4, %v462_v9, %v572_v13 }
 0x673   :  { %573 = vmatmul.msk.f32.vlgmr.msrb.gmra.mxu3 %vm113_vm6, %v469_v14 }
 0x6f6   :  { %v493_v15 = vpop.f32.mrf.mxu3 }
 0x6f7   :  { %v494_v16 = vadd.f32 %v594_v6, %v493_v15 }
 0x6f9   :  { %v496_v17 = vsub.f32 0.0, %v494_v16 }
 0x6fb   :  { %v497_v18 = vmul.f32 1.442695, %v496_v17 }
 0x6fd   :  { %617 = vpow2.f32 %v497_v18 }
 0x703   :  { %v618_v19 = vpop.eup %617 }
 0x704   :  { %v499_v20 = vadd.f32 1.0, %v618_v19 }
 0x706   :  { %619 = vrcp.f32 %v499_v20  ;;  %v511_v24 = vand.u32 2147483648, %v499_v20  ;;  %v509_v26 = vand.u32 2147483647, %v499_v20  ;;  %vm505_vm7 = vweird.f32 %v499_v20 }
 0x707   :  { %621 = vpow2.f32 %v244_v27 }
 0x708   :  { %v512_v29 = vor.u32 1.1754944e-38, %v511_v24  ;;  %vm510_vm9 = vcmp.eq.f32.partialorder %v509_v26, 8.507059e+37 }
 0x70c   :  { %v620_v21 = vpop.eup %619 }
 0x70d   :  { %v501_v22 = vmul.f32 %v620_v21, %v499_v20  ;;  %vm506_vm5 = vweird.f32 %v620_v21  ;;  %v622_v34 = vpop.eup %621 }
 0x70e   :  { %vm507_vm8 = vmor %vm505_vm7, %vm506_vm5  ;;  %v246_v35 = vsub.f32 0.0, %v622_v34 }
 0x70f   :  { %v502_v23 = vsub.f32 1.0, %v501_v22 }
 0x711   :  { %v503_v25 = vmul.f32 %v620_v21, %v502_v23 }
 0x713   :  { %v504_v28 = vadd.f32 %v620_v21, %v503_v25 }
 0x715   :  { %v508_v30 = vsel %vm507_vm8, %v620_v21, %v504_v28 }
 0x716   :  { %v513_v31 = vsel %vm510_vm9, %v512_v29, %v508_v30 }
 0x717   :  { %v515_v32 = vadd.f32 1e-05, %v513_v31 }
 0x719   :  { %519 = vrot.lane.b32.xlu2 %v515_v32, %s651_s18 }
 0x721   :  { %531 = vrot.lane.b32.xlu2 %v246_v35, %s653_s0 }
 0x773   :  { %v520_v38 = vpop.permute.xlu2 %519 }
 0x774   :  { %v534_v40 = vsel %vm113_vm6, %v517_v37, %v520_v38 }
 0x775   :  { %v536_v41 = vsel %vm535_vm10, %v534_v40, %v524_v33 }
 0x776   :  { %v538_v42 = vsel %vm537_vm11, %v536_v41, %v696_v39 }
 0x777   :  { %v540_v44 = vsel %vm539_vm12, %v538_v42, %v528_v43 }
 0x77b   :  { %v532_v45 = vpop.permute.xlu2 %531 }
 0x77c   :  { %v542_v46 = vsel %vm541_vm13, %v540_v44, %v532_v45 }
 0x77d   :  { %v544_v47 = vsel %vm543_vm14, %v542_v46, 0.0 }
 0x77e   :  { %545 = vst [vmem:[%s737_s3] sm:$0xff] %v544_v47 }
 0x77f   :  { %550 = vsyncpa [#allocation3], 1 }

</bundles_post_ra>
